<compile_context>
chip_gen: v5e
topology: v5e:2x2
jax: 0.10.0
libtpu: 0.0.40
codegen_flags: <defaults>
</compile_context>

<pallas_src>
import jax
import jax.numpy as jnp
from jax.experimental import pallas as pl
from jax.experimental.pallas import tpu as pltpu


def _round_up(n, m):
    return ((n + m - 1) // m) * m


def _make_kernel(sub_rows, n_sub, unroll):
    """Fused 4-layer MLP over one (TM, D) batch tile, in `n_sub` sub-chunks."""

    def kernel(x_ref, w1_ref, b1_ref, w2_ref, b2_ref,
               w3_ref, b3_ref, w4t_ref, b4_ref, o_ref):
        # Hoist weight / bias loads out of the sub-chunk loop: loaded once per
        # grid step, closed over by the loop body (not re-emitted per chunk).
        w1 = w1_ref[...]          # (D, 64)  bf16
        w2 = w2_ref[...]          # (64, 32) bf16
        w3 = w3_ref[...]          # (32, 16) bf16
        w4t = w4t_ref[...]        # (1, 16)  bf16  (transposed fc4 weight)
        b1 = b1_ref[...]          # (1, 64)  f32
        b2 = b2_ref[...]          # (1, 32)  f32
        b3 = b3_ref[...]          # (1, 16)  f32
        b4 = b4_ref[...]          # (1, 1)   f32

        def sub_chunk(c, carry):
            r0 = pl.multiple_of(c * sub_rows, sub_rows)
            # f32 -> bf16 cast happens here on the VPU (no wrapper HBM pass).
            xb = x_ref[pl.ds(r0, sub_rows), :].astype(jnp.bfloat16)

            h = jnp.dot(xb, w1, preferred_element_type=jnp.float32) + b1
            h = jnp.maximum(h, 0.0).astype(jnp.bfloat16)

            h = jnp.dot(h, w2, preferred_element_type=jnp.float32) + b2
            h = jnp.maximum(h, 0.0).astype(jnp.bfloat16)

            h = jnp.dot(h, w3, preferred_element_type=jnp.float32) + b3
            h = jnp.maximum(h, 0.0).astype(jnp.bfloat16)          # (sub, 16)

            # Layer 4 (16 -> 1): contract the last dims of (1,16) x (sub,16)
            # so the result is already lane-dense (1, sub); avoids a separate
            # (sub,1)->(1,sub) relayout and the lane-sparse masked store.
            z = jax.lax.dot_general(
                w4t, h, (((1,), (1,)), ((), ())),
                preferred_element_type=jnp.float32) + b4          # (1, sub)

            # Exact sigmoid (exp on EUP, exact reciprocal); output is tiny.
            y = pl.reciprocal(1.0 + jnp.exp(-z))
            o_ref[0, :, pl.ds(r0, sub_rows)] = y
            return carry

        jax.lax.fori_loop(0, n_sub, sub_chunk, 0, unroll=unroll)

    return kernel


def nn_model_forward(x, params, *, block_rows=16384, sub_rows=512):
    """y = sigmoid(relu(relu(relu(x@W1+b1)@W2+b2)@W3+b3)@W4+b4), batch-tiled."""
    (w1, b1), (w2, b2), (w3, b3), (w4, b4) = params
    B, D = x.shape

    # Sub-chunk: multiple of 128 (lane-dense output stores, aligned slices).
    sub = max(128, _round_up(min(sub_rows, block_rows), 128))
    # Batch tile: as large as block_rows, but capped so the grid keeps >= 2
    # steps (both v7x TensorCores busy) whenever the batch allows it.
    tm = min(_round_up(block_rows, sub),
             max(sub, _round_up(pl.cdiv(B, 2), sub)))
    grid = pl.cdiv(B, tm)                 # ragged last block handled by Pallas
    n_sub = tm // sub
    unroll = int(min(4, n_sub))           # partial unroll; no code bloat

    # Weights to bf16 (tiny, one-off); fc4 weight pre-transposed to (1, 16).
    w1b, w2b, w3b = (w.astype(jnp.bfloat16) for w in (w1, w2, w3))
    w4t = jnp.transpose(w4.astype(jnp.bfloat16))      # (1, 16)

    const2 = lambda i: (0, 0)             # weights / biases stay VMEM-resident

    out = pl.pallas_call(
        _make_kernel(sub, n_sub, unroll),
        out_shape=jax.ShapeDtypeStruct((grid, 1, tm), jnp.float32),
        grid=(grid,),
        in_specs=[
            pl.BlockSpec((tm, D), lambda i: (i, 0)),   # x: f32, batch-tiled
            pl.BlockSpec(w1b.shape, const2), pl.BlockSpec(b1.shape, const2),
            pl.BlockSpec(w2b.shape, const2), pl.BlockSpec(b2.shape, const2),
            pl.BlockSpec(w3b.shape, const2), pl.BlockSpec(b3.shape, const2),
            pl.BlockSpec(w4t.shape, const2), pl.BlockSpec(b4.shape, const2),
        ],
        out_specs=pl.BlockSpec((1, 1, tm), lambda i: (i, 0, 0)),  # lane-dense
        compiler_params=pltpu.CompilerParams(
            dimension_semantics=("parallel",),          # megacore on v7x
            vmem_limit_bytes=32 * 1024 * 1024,
        ),
    )(x, w1b, b1, w2b, b2, w3b, b3, w4t, b4)

    # (grid, 1, tm) -> (B, 1); drops the padded tail rows of the ragged block.
    return out.reshape(grid * tm)[:B].reshape(B, 1)


def init_linear(key, fan_in, fan_out):
    # PyTorch nn.Linear default init: U(-1/sqrt(fan_in), 1/sqrt(fan_in))
    kw, kb = jax.random.split(key)
    bound = 1.0 / jnp.sqrt(fan_in)
    w = jax.random.uniform(kw, (fan_in, fan_out), jnp.float32, -bound, bound)
    b = jax.random.uniform(kb, (1, fan_out), jnp.float32, -bound, bound)
    return w, b


def _reference_bf16(x, params):
    """Pure-JAX reference with the same bf16 matmul / f32 elementwise recipe."""
    (w1, b1), (w2, b2), (w3, b3), (w4, b4) = params
    bf = jnp.bfloat16
    h = x.astype(bf)
    h = jnp.maximum(jnp.dot(h, w1.astype(bf),
                            preferred_element_type=jnp.float32) + b1, 0.0)
    h = jnp.maximum(jnp.dot(h.astype(bf), w2.astype(bf),
                            preferred_element_type=jnp.float32) + b2, 0.0)
    h = jnp.maximum(jnp.dot(h.astype(bf), w3.astype(bf),
                            preferred_element_type=jnp.float32) + b3, 0.0)
    z = jnp.dot(h.astype(bf), w4.astype(bf),
                preferred_element_type=jnp.float32) + b4
    return jax.nn.sigmoid(z)


if __name__ == "__main__":
    key = jax.random.PRNGKey(0)
    k_x, k1, k2, k3, k4 = jax.random.split(key, 5)

    input_dim = 32   # X_train.shape[1] (synthetic)
    batch = 300      # not a multiple of the tile -> exercises the ragged path

    params = (
        init_linear(k1, input_dim, 64),
        init_linear(k2, 64, 32),
        init_linear(k3, 32, 16),
        init_linear(k4, 16, 1),
    )

    x = jax.random.normal(k_x, (batch, input_dim), jnp.float32)

    # Small tile sizes so the demo exercises grid=2 (megacore path), a ragged
    # last tile, and the inner sub-chunk loop; production defaults are
    # block_rows=16384, sub_rows=512.
    out = nn_model_forward(x, params, block_rows=256, sub_rows=128)
    out = jax.block_until_ready(out)

    ref = _reference_bf16(x, params)
    assert out.shape == (batch, 1), out.shape
    max_err = float(jnp.max(jnp.abs(out - ref)))
    assert max_err < 1e-2, f"mismatch vs reference, max abs err {max_err}"

    print("KERNEL_OK")
</pallas_src>

<mosaic_0001>
module attributes {stable_mosaic.version = 11 : i64} {
  func.func @kernel(%arg0: i32, %arg1: memref<256x32xf32, #tpu.memory_space<vmem>>, %arg2: memref<32x64xbf16, #tpu.memory_space<vmem>>, %arg3: memref<1x64xf32, #tpu.memory_space<vmem>>, %arg4: memref<64x32xbf16, #tpu.memory_space<vmem>>, %arg5: memref<1x32xf32, #tpu.memory_space<vmem>>, %arg6: memref<32x16xbf16, #tpu.memory_space<vmem>>, %arg7: memref<1x16xf32, #tpu.memory_space<vmem>>, %arg8: memref<1x16xbf16, #tpu.memory_space<vmem>>, %arg9: memref<1x1xf32, #tpu.memory_space<vmem>>, %arg10: memref<1x1x256xf32, #tpu.memory_space<vmem>>) attributes {dimension_semantics = [#tpu.dimension_semantics<parallel>], iteration_bounds = array<i64: 2>, scalar_prefetch = 0 : i64, scratch_operands = 0 : i64, tpu.core_type = #tpu.core_type<tc>, window_params = [{transform_indices = @transform_0, window_bounds = array<i64: 256, 32>}, {pipeline_mode = #tpu.pipeline_mode<synchronous>, transform_indices = @transform_1, window_bounds = array<i64: 32, 64>}, {pipeline_mode = #tpu.pipeline_mode<synchronous>, transform_indices = @transform_2, window_bounds = array<i64: 1, 64>}, {pipeline_mode = #tpu.pipeline_mode<synchronous>, transform_indices = @transform_3, window_bounds = array<i64: 64, 32>}, {pipeline_mode = #tpu.pipeline_mode<synchronous>, transform_indices = @transform_4, window_bounds = array<i64: 1, 32>}, {pipeline_mode = #tpu.pipeline_mode<synchronous>, transform_indices = @transform_5, window_bounds = array<i64: 32, 16>}, {pipeline_mode = #tpu.pipeline_mode<synchronous>, transform_indices = @transform_6, window_bounds = array<i64: 1, 16>}, {pipeline_mode = #tpu.pipeline_mode<synchronous>, transform_indices = @transform_7, window_bounds = array<i64: 1, 16>}, {pipeline_mode = #tpu.pipeline_mode<synchronous>, transform_indices = @transform_8, window_bounds = array<i64: 1, 1>}, {transform_indices = @transform_9, window_bounds = array<i64: 1, 1, 256>}]} {
    %c0 = arith.constant 0 : index
    %c0_0 = arith.constant 0 : index
    %0 = vector.load %arg2[%c0, %c0_0] : memref<32x64xbf16, #tpu.memory_space<vmem>>, vector<32x64xbf16>
    %c0_1 = arith.constant 0 : index
    %c0_2 = arith.constant 0 : index
    %1 = vector.load %arg4[%c0_1, %c0_2] : memref<64x32xbf16, #tpu.memory_space<vmem>>, vector<64x32xbf16>
    %c0_3 = arith.constant 0 : index
    %c0_4 = arith.constant 0 : index
    %2 = vector.load %arg6[%c0_3, %c0_4] : memref<32x16xbf16, #tpu.memory_space<vmem>>, vector<32x16xbf16>
    %c0_5 = arith.constant 0 : index
    %c0_6 = arith.constant 0 : index
    %3 = vector.load %arg8[%c0_5, %c0_6] : memref<1x16xbf16, #tpu.memory_space<vmem>>, vector<1x16xbf16>
    %c0_7 = arith.constant 0 : index
    %c0_8 = arith.constant 0 : index
    %4 = vector.load %arg3[%c0_7, %c0_8] : memref<1x64xf32, #tpu.memory_space<vmem>>, vector<1x64xf32>
    %c0_9 = arith.constant 0 : index
    %c0_10 = arith.constant 0 : index
    %5 = vector.load %arg5[%c0_9, %c0_10] : memref<1x32xf32, #tpu.memory_space<vmem>>, vector<1x32xf32>
    %c0_11 = arith.constant 0 : index
    %c0_12 = arith.constant 0 : index
    %6 = vector.load %arg7[%c0_11, %c0_12] : memref<1x16xf32, #tpu.memory_space<vmem>>, vector<1x16xf32>
    %c0_13 = arith.constant 0 : index
    %c0_14 = arith.constant 0 : index
    %7 = vector.load %arg9[%c0_13, %c0_14] : memref<1x1xf32, #tpu.memory_space<vmem>>, vector<1x1xf32>
    %c0_i32 = arith.constant 0 : i32
    %c128_i32 = arith.constant 128 : i32
    %8 = arith.muli %c0_i32, %c128_i32 : i32
    %9 = tpu.assume_multiple %8, 128 : i32
    %10 = arith.index_cast %9 : i32 to index
    %c0_15 = arith.constant 0 : index
    %11 = vector.load %arg1[%10, %c0_15] : memref<256x32xf32, #tpu.memory_space<vmem>>, vector<128x32xf32>
    %12 = arith.truncf %11 : vector<128x32xf32> to vector<128x32xbf16>
    %cst = arith.constant dense<0.000000e+00> : vector<128x64xf32>
    %13 = tpu.matmul %12, %0, %cst {dimension_numbers = #tpu.dot_dimension_numbers<[1], [0], [0], [1], [0, 0, 1, 1], [], []>} : vector<128x32xbf16>, vector<32x64xbf16>, vector<128x64xf32> -> vector<128x64xf32>
    %14 = vector.broadcast %4 : vector<1x64xf32> to vector<128x64xf32>
    %15 = arith.addf %13, %14 : vector<128x64xf32>
    %cst_16 = arith.constant 0.000000e+00 : f32
    %16 = vector.broadcast %cst_16 : f32 to vector<128x64xf32>
    %17 = arith.maximumf %15, %16 : vector<128x64xf32>
    %18 = arith.truncf %17 : vector<128x64xf32> to vector<128x64xbf16>
    %cst_17 = arith.constant dense<0.000000e+00> : vector<128x32xf32>
    %19 = tpu.matmul %18, %1, %cst_17 {dimension_numbers = #tpu.dot_dimension_numbers<[1], [0], [0], [1], [0, 0, 1, 1], [], []>} : vector<128x64xbf16>, vector<64x32xbf16>, vector<128x32xf32> -> vector<128x32xf32>
    %20 = vector.broadcast %5 : vector<1x32xf32> to vector<128x32xf32>
    %21 = arith.addf %19, %20 : vector<128x32xf32>
    %cst_18 = arith.constant 0.000000e+00 : f32
    %22 = vector.broadcast %cst_18 : f32 to vector<128x32xf32>
    %23 = arith.maximumf %21, %22 : vector<128x32xf32>
    %24 = arith.truncf %23 : vector<128x32xf32> to vector<128x32xbf16>
    %cst_19 = arith.constant dense<0.000000e+00> : vector<128x16xf32>
    %25 = tpu.matmul %24, %2, %cst_19 {dimension_numbers = #tpu.dot_dimension_numbers<[1], [0], [0], [1], [0, 0, 1, 1], [], []>} : vector<128x32xbf16>, vector<32x16xbf16>, vector<128x16xf32> -> vector<128x16xf32>
    %26 = vector.broadcast %6 : vector<1x16xf32> to vector<128x16xf32>
    %27 = arith.addf %25, %26 : vector<128x16xf32>
    %cst_20 = arith.constant 0.000000e+00 : f32
    %28 = vector.broadcast %cst_20 : f32 to vector<128x16xf32>
    %29 = arith.maximumf %27, %28 : vector<128x16xf32>
    %30 = arith.truncf %29 : vector<128x16xf32> to vector<128x16xbf16>
    %cst_21 = arith.constant dense<0.000000e+00> : vector<1x128xf32>
    %31 = tpu.matmul %3, %30, %cst_21 {dimension_numbers = #tpu.dot_dimension_numbers<[1], [1], [0], [0], [0, 0, 1, 0], [], []>} : vector<1x16xbf16>, vector<128x16xbf16>, vector<1x128xf32> -> vector<1x128xf32>
    %32 = vector.broadcast %7 : vector<1x1xf32> to vector<1x128xf32>
    %33 = arith.addf %31, %32 : vector<1x128xf32>
    %cst_22 = arith.constant 0.000000e+00 : f32
    %34 = vector.broadcast %cst_22 : f32 to vector<1x128xf32>
    %35 = arith.subf %34, %33 : vector<1x128xf32>
    %36 = math.exp %35 : vector<1x128xf32>
    %cst_23 = arith.constant 1.000000e+00 : f32
    %37 = vector.broadcast %cst_23 : f32 to vector<1x128xf32>
    %38 = arith.addf %37, %36 : vector<1x128xf32>
    %39 = tpu.reciprocal %38 : vector<1x128xf32> -> vector<1x128xf32>
    %c0_24 = arith.constant 0 : index
    %c0_25 = arith.constant 0 : index
    %40 = arith.index_cast %9 : i32 to index
    %41 = vector.load %arg10[%c0_24, %c0_25, %40] : memref<1x1x256xf32, #tpu.memory_space<vmem>>, vector<1x1x128xf32>
    %42 = vector.shape_cast %41 : vector<1x1x128xf32> to vector<1x128xf32>
    %43 = vector.shape_cast %39 : vector<1x128xf32> to vector<1x1x128xf32>
    tpu.vector_store %arg10[%c0_24, %c0_25, %40], %43 {strides = array<i32>} : memref<1x1x256xf32, #tpu.memory_space<vmem>>, vector<1x1x128xf32>,
    %c1_i32 = arith.constant 1 : i32
    %c128_i32_26 = arith.constant 128 : i32
    %44 = arith.muli %c1_i32, %c128_i32_26 : i32
    %45 = tpu.assume_multiple %44, 128 : i32
    %46 = arith.index_cast %45 : i32 to index
    %c0_27 = arith.constant 0 : index
    %47 = vector.load %arg1[%46, %c0_27] : memref<256x32xf32, #tpu.memory_space<vmem>>, vector<128x32xf32>
    %48 = arith.truncf %47 : vector<128x32xf32> to vector<128x32xbf16>
    %cst_28 = arith.constant dense<0.000000e+00> : vector<128x64xf32>
    %49 = tpu.matmul %48, %0, %cst_28 {dimension_numbers = #tpu.dot_dimension_numbers<[1], [0], [0], [1], [0, 0, 1, 1], [], []>} : vector<128x32xbf16>, vector<32x64xbf16>, vector<128x64xf32> -> vector<128x64xf32>
    %50 = vector.broadcast %4 : vector<1x64xf32> to vector<128x64xf32>
    %51 = arith.addf %49, %50 : vector<128x64xf32>
    %cst_29 = arith.constant 0.000000e+00 : f32
    %52 = vector.broadcast %cst_29 : f32 to vector<128x64xf32>
    %53 = arith.maximumf %51, %52 : vector<128x64xf32>
    %54 = arith.truncf %53 : vector<128x64xf32> to vector<128x64xbf16>
    %cst_30 = arith.constant dense<0.000000e+00> : vector<128x32xf32>
    %55 = tpu.matmul %54, %1, %cst_30 {dimension_numbers = #tpu.dot_dimension_numbers<[1], [0], [0], [1], [0, 0, 1, 1], [], []>} : vector<128x64xbf16>, vector<64x32xbf16>, vector<128x32xf32> -> vector<128x32xf32>
    %56 = vector.broadcast %5 : vector<1x32xf32> to vector<128x32xf32>
    %57 = arith.addf %55, %56 : vector<128x32xf32>
    %cst_31 = arith.constant 0.000000e+00 : f32
    %58 = vector.broadcast %cst_31 : f32 to vector<128x32xf32>
    %59 = arith.maximumf %57, %58 : vector<128x32xf32>
    %60 = arith.truncf %59 : vector<128x32xf32> to vector<128x32xbf16>
    %cst_32 = arith.constant dense<0.000000e+00> : vector<128x16xf32>
    %61 = tpu.matmul %60, %2, %cst_32 {dimension_numbers = #tpu.dot_dimension_numbers<[1], [0], [0], [1], [0, 0, 1, 1], [], []>} : vector<128x32xbf16>, vector<32x16xbf16>, vector<128x16xf32> -> vector<128x16xf32>
    %62 = vector.broadcast %6 : vector<1x16xf32> to vector<128x16xf32>
    %63 = arith.addf %61, %62 : vector<128x16xf32>
    %cst_33 = arith.constant 0.000000e+00 : f32
    %64 = vector.broadcast %cst_33 : f32 to vector<128x16xf32>
    %65 = arith.maximumf %63, %64 : vector<128x16xf32>
    %66 = arith.truncf %65 : vector<128x16xf32> to vector<128x16xbf16>
    %cst_34 = arith.constant dense<0.000000e+00> : vector<1x128xf32>
    %67 = tpu.matmul %3, %66, %cst_34 {dimension_numbers = #tpu.dot_dimension_numbers<[1], [1], [0], [0], [0, 0, 1, 0], [], []>} : vector<1x16xbf16>, vector<128x16xbf16>, vector<1x128xf32> -> vector<1x128xf32>
    %68 = vector.broadcast %7 : vector<1x1xf32> to vector<1x128xf32>
    %69 = arith.addf %67, %68 : vector<1x128xf32>
    %cst_35 = arith.constant 0.000000e+00 : f32
    %70 = vector.broadcast %cst_35 : f32 to vector<1x128xf32>
    %71 = arith.subf %70, %69 : vector<1x128xf32>
    %72 = math.exp %71 : vector<1x128xf32>
    %cst_36 = arith.constant 1.000000e+00 : f32
    %73 = vector.broadcast %cst_36 : f32 to vector<1x128xf32>
    %74 = arith.addf %73, %72 : vector<1x128xf32>
    %75 = tpu.reciprocal %74 : vector<1x128xf32> -> vector<1x128xf32>
    %c0_37 = arith.constant 0 : index
    %c0_38 = arith.constant 0 : index
    %76 = arith.index_cast %45 : i32 to index
    %77 = vector.load %arg10[%c0_37, %c0_38, %76] : memref<1x1x256xf32, #tpu.memory_space<vmem>>, vector<1x1x128xf32>
    %78 = vector.shape_cast %77 : vector<1x1x128xf32> to vector<1x128xf32>
    %79 = vector.shape_cast %75 : vector<1x128xf32> to vector<1x1x128xf32>
    tpu.vector_store %arg10[%c0_37, %c0_38, %76], %79 {strides = array<i32>} : memref<1x1x256xf32, #tpu.memory_space<vmem>>, vector<1x1x128xf32>,
    %c2_i32 = arith.constant 2 : i32
    return
  }
  func.func @transform_0(%arg0: i32) -> (i32, i32) {
    %c0_i32 = arith.constant 0 : i32
    %c0_i32_0 = arith.constant 0 : i32
    return %arg0, %c0_i32 : i32, i32
  }
  func.func @transform_1(%arg0: i32) -> (i32, i32) {
    %c0_i32 = arith.constant 0 : i32
    %c0_i32_0 = arith.constant 0 : i32
    %c0_i32_1 = arith.constant 0 : i32
    return %c0_i32, %c0_i32_0 : i32, i32
  }
  func.func @transform_2(%arg0: i32) -> (i32, i32) {
    %c0_i32 = arith.constant 0 : i32
    %c0_i32_0 = arith.constant 0 : i32
    %c0_i32_1 = arith.constant 0 : i32
    return %c0_i32, %c0_i32_0 : i32, i32
  }
  func.func @transform_3(%arg0: i32) -> (i32, i32) {
    %c0_i32 = arith.constant 0 : i32
    %c0_i32_0 = arith.constant 0 : i32
    %c0_i32_1 = arith.constant 0 : i32
    return %c0_i32, %c0_i32_0 : i32, i32
  }
  func.func @transform_4(%arg0: i32) -> (i32, i32) {
    %c0_i32 = arith.constant 0 : i32
    %c0_i32_0 = arith.constant 0 : i32
    %c0_i32_1 = arith.constant 0 : i32
    return %c0_i32, %c0_i32_0 : i32, i32
  }
  func.func @transform_5(%arg0: i32) -> (i32, i32) {
    %c0_i32 = arith.constant 0 : i32
    %c0_i32_0 = arith.constant 0 : i32
    %c0_i32_1 = arith.constant 0 : i32
    return %c0_i32, %c0_i32_0 : i32, i32
  }
  func.func @transform_6(%arg0: i32) -> (i32, i32) {
    %c0_i32 = arith.constant 0 : i32
    %c0_i32_0 = arith.constant 0 : i32
    %c0_i32_1 = arith.constant 0 : i32
    return %c0_i32, %c0_i32_0 : i32, i32
  }
  func.func @transform_7(%arg0: i32) -> (i32, i32) {
    %c0_i32 = arith.constant 0 : i32
    %c0_i32_0 = arith.constant 0 : i32
    %c0_i32_1 = arith.constant 0 : i32
    return %c0_i32, %c0_i32_0 : i32, i32
  }
  func.func @transform_8(%arg0: i32) -> (i32, i32) {
    %c0_i32 = arith.constant 0 : i32
    %c0_i32_0 = arith.constant 0 : i32
    %c0_i32_1 = arith.constant 0 : i32
    return %c0_i32, %c0_i32_0 : i32, i32
  }
  func.func @transform_9(%arg0: i32) -> (i32, i32, i32) {
    %c0_i32 = arith.constant 0 : i32
    %c0_i32_0 = arith.constant 0 : i32
    %c0_i32_1 = arith.constant 0 : i32
    return %arg0, %c0_i32, %c0_i32_0 : i32, i32, i32
  }
}

</mosaic_0001>

<bundles_post_ra>
// kernel: tpu_custom_call.1
= control target key start
LH: loop header
LB: loop body
LE: loop exit
PB: predicated region body
PF: predicated region fallthrough
CT: control target
= control target key end

     0   :  { %s1928_s0 = inlined_call_operand.vmem [shape: f32[300,32], index: 0, kind: input, shape index: {}]   ;;  %s1929_s1 = inlined_call_operand.vmem [shape: bf16[32,64], index: 1, kind: input, shape index: {}]   ;;  %s1930_s2 = inlined_call_operand.vmem [shape: f32[1,64], index: 2, kind: input, shape index: {}]   ;;  %s1931_s3 = inlined_call_operand.vmem [shape: bf16[64,32], index: 3, kind: input, shape index: {}]   ;;  %s1932_s4 = inlined_call_operand.vmem [shape: f32[1,32], index: 4, kind: input, shape index: {}]   ;;  %s1933_s5 = inlined_call_operand.vmem [shape: bf16[32,16], index: 5, kind: input, shape index: {}]   ;;  %s1934_s6 = inlined_call_operand.vmem [shape: f32[1,16], index: 6, kind: input, shape index: {}]   ;;  %s1935_s7 = inlined_call_operand.vmem [shape: bf16[1,16], index: 7, kind: input, shape index: {}]   ;;  %s1936_s8 = inlined_call_operand.<no memory space> [shape: f32[1,1], index: 8, kind: input, shape index: {}]   ;;  %s1937_s9 = inlined_call_operand.hbm [shape: f32[2,1,256], index: 9, kind: output, shape index: {}]  }
   0x1   :  { %v14_v0 = vstv %s1936_s8 }
   0x2   :  { %15 = vst [vmem:[#allocation2] sm:$0x1] %v14_v0 }
   0x3   :  { %16 = vsyncpa [#allocation4], 0 }
   0x4   :  { %18 = vsyncpa [#allocation4 + $0x1], 0  ;;  %s1559_s11 = smov 0   ;;  %s1561_s12 = smov 0  }
   0x5   :  { %s1563_s13 = smov 0   ;;  %s1565_s14 = smov 0  }
   0x6 LB: > { %s1580_s8 = sadd.s32 4294967295, %s1503_s14   ;;  %s1269_s15 = sadd.s32 4294967294, %s1503_s14   ;;  %s1503_s14 = sphi %s1565_s14, %s1945_s14   ;;  %s1499_s13 = sphi %s1563_s13, %s1944_s13   ;;  %s1495_s12 = sphi %s1561_s12, %s1943_s12   ;;  %s1491_s11 = sphi %s1559_s11, %s1942_s11  }
   0x7   : > { %s1584_s16 = sadd.s32 1, %s1503_s14   ;;  %s225_s17 = sadd.s32 1, %s1499_s13 }
   0x8   : > { %s222_s18 = ssub.s32 %s1503_s14, %s1584_s16  ;;  %p235_p0 = scmp.ne.s32.totalorder %s1499_s13, %s1495_s12 }
   0x9   : > { %p223_p1 = scmp.eq.s32.totalorder %s222_s18, 0  ;;  %p236_p2 = scmp.eq.s32.totalorder %s1580_s8, 1 }
   0xa   : > { %p241_p3 = scmp.ne.s32.totalorder %s1495_s12, %s1491_s11  ;;  %p242_p4 = scmp.eq.s32.totalorder %s1269_s15, 1 }
   0xb   : > { %s1595_s19 = scalar_select %p223_p1, %s1499_s13, %s225_s17  }
   0xc   : > { %p1597_p5 = por %p236_p2, %p235_p0  ;;  %p1601_p6 = por %p242_p4, %p241_p3 }
   0xd   : > { %p1272_p7 = scmp.ge.s32.totalorder %s1503_s14, 1  ;;  %p301_p8 = scmp.lt.s32.totalorder %s1503_s14, 3 }
   0xf   : > { %p302_p9 = pnand %p1272_p7, %p301_p8 }
  0x10   : > { %s1274_s24 = sshll.u32 (!%p302_p9), %s1580_s8, 5  ;;  %s1376_s28 = sshll.u32 (!%p302_p9), %s1580_s8, 1 }
  0x11   : > { %305 = sbr.rel (%p302_p9) target bundleno = 1417 (0x589), region = 56  ;;  %p346_p10 = scmp.lt.s32.totalorder (!%p302_p9), %s1274_s24, 37 }
  0x12   : > { %s1205_s15 = scalar_lea.hbm (!%p302_p9), %s1937_s9, %s1376_s28 }
  0x13   : > { %s1209_s18 = sshll.u32 (!%p302_p9), %s1205_s15, 4  ;;  %s1210_s18 = int_to_ptr.hbm [resolvable:$true] %s1209_s18 }
  0x14   : > { %s1455_s22 = sshra.s32 (!%p302_p9), %s1210_s18, 4  ;;  %s1456_s22 = int_to_ptr.hbm [resolvable:$true] %s1455_s22 }
  0x15   : > { %s1457_s23 = scalar_lea.hbm (!%p302_p9), %s1456_s22, 2  ;;  %p1462_p0 = scmp.lt.s32.totalorder (!%p302_p9), %s1456_s22, %s1937_s9 }
  0x16   : > { %v1610_v1 = vld [vmem:[%s1929_s1 + $0x8] sm:$0xff]  ;;  %v1617_v2 = vld [vmem:[%s1929_s1] sm:$0xff]  ;;  %s1947_s24 = smov (!%p346_p10, %s1274_s24), 37  ;;  %vm416_vm0 = vcmask 261120   ;;  %v1384_v27 = vld [vmem:[%s1931_s3 + $0x18] sm:$0xff]  ;;  %vm541_vm1 = vcmask 523264   ;;  %p1458_p11 = scmp.ne.s32.totalorder %s1456_s22, %s1457_s23 }
  0x17   : > { %447 = vmatpush.bf16.msra.mxu0 %v1610_v1  ;;  %1387 = vmatpush.bf16.msra.mxu1 %v1610_v1  ;;  %s1275_s27 = sshll.u32 %s1947_s24, 3  ;;  %v1383_v28 = vld [vmem:[%s1931_s3 + $0x10] sm:$0xff]  ;;  %v1382_v29 = vld [vmem:[%s1931_s3 + $0x8] sm:$0xff]  ;;  %v1381_v30 = vld [vmem:[%s1931_s3] sm:$0xff]  ;;  %vm757_vm2 = vcmask 130048  }
  0x18   : > { %s1624_s30 = scalar_lea.vmem %s1928_s0, %s1275_s27  ;;  %v1666_v32 = vld [vmem:[%s1930_s2] ss:$0 sm:$0xff]  ;;  %p1459_p12 = pnand %p1458_p11, %p1597_p5 }
  0x19   : > { %v377_v3 = vld [vmem:[%s1624_s30] sm:$0xff]  ;;  %v378_v4 = vld [vmem:[%s1624_s30 + $0x8] sm:$0xff]  ;;  %v379_v6 = vld [vmem:[%s1624_s30 + $0x10] sm:$0xff] }
  0x1a   : > { %v393_v5 = vpack.c.bf16 %v378_v4, %v377_v3  ;;  %v380_v7 = vld [vmem:[%s1624_s30 + $0x18] sm:$0xff]  ;;  %v381_v9 = vld [vmem:[%s1624_s30 + $0x20] sm:$0xff]  ;;  %v382_v10 = vld [vmem:[%s1624_s30 + $0x28] sm:$0xff]  ;;  %p1460_p13 = pneg %p1459_p12 }
  0x1b   : > { %448 = vmatpush.bf16.msra.mxu0 %v1617_v2  ;;  %1388 = vmatpush.bf16.msra.mxu1 %v1617_v2  ;;  %v394_v8 = vpack.c.bf16 %v380_v7, %v379_v6  ;;  %v395_v11 = vpack.c.bf16 %v382_v10, %v381_v9  ;;  %v383_v12 = vld [vmem:[%s1624_s30 + $0x30] sm:$0xff]  ;;  %v384_v13 = vld [vmem:[%s1624_s30 + $0x38] sm:$0xff]  ;;  %v389_v15 = vld [vmem:[%s1624_s30 + $0x60] sm:$0xff] }
  0x1c   : > { %v396_v14 = vpack.c.bf16 %v384_v13, %v383_v12  ;;  %v390_v16 = vld [vmem:[%s1624_s30 + $0x68] sm:$0xff]  ;;  %v385_v18 = vld [vmem:[%s1624_s30 + $0x40] sm:$0xff]  ;;  %v391_v21 = vld [vmem:[%s1624_s30 + $0x70] sm:$0xff] }
  0x1d   : > { %v399_v17 = vpack.c.bf16 %v390_v16, %v389_v15  ;;  %v386_v19 = vld [vmem:[%s1624_s30 + $0x48] sm:$0xff]  ;;  %v392_v22 = vld [vmem:[%s1624_s30 + $0x78] sm:$0xff]  ;;  %v387_v24 = vld [vmem:[%s1624_s30 + $0x50] sm:$0xff] }
  0x1e   : > { %1284 = vmatmul.msk.bf16.vlgmr.msra.gmra.mxu0 %vm416_vm0, %v393_v5  ;;  %v397_v20 = vpack.c.bf16 %v386_v19, %v385_v18  ;;  %v400_v23 = vpack.c.bf16 %v392_v22, %v391_v21  ;;  %v388_v25 = vld [vmem:[%s1624_s30 + $0x58] sm:$0xff]  ;;  %v1386_v21 = vld [vmem:[%s1933_s5 + $0x8] sm:$0xff] }
  0x1f   : > { %1290 = vmatmul.msk.bf16.vlgmr.msra.gmra.mxu1 %vm416_vm0, %v399_v17  ;;  %v398_v26 = vpack.c.bf16 %v388_v25, %v387_v24  ;;  %971 = vmatpush.bf16.msrb.mxu0 %v1384_v27  ;;  %v1385_v24 = vld [vmem:[%s1933_s5] sm:$0xff] }
  0x20   : > { %570 = vmatpush.bf16.msrb.mxu1 %v1384_v27  ;;  %684 = vmatpush.bf16.msra.mxu2 %v1386_v21 }
  0x23   : > { %972 = vmatpush.bf16.msrb.mxu0 %v1383_v28 }
  0x24   : > { %571 = vmatpush.bf16.msrb.mxu1 %v1383_v28  ;;  %685 = vmatpush.bf16.msra.mxu2 %v1385_v24 }
  0x27   : > { %973 = vmatpush.bf16.msrb.mxu0 %v1382_v29 }
  0x28   : > { %572 = vmatpush.bf16.msrb.mxu1 %v1382_v29  ;;  %1070 = vmatpush.bf16.msrb.mxu2 %v1386_v21  ;;  %v1701_v29 = vld [vmem:[%s1932_s4] ss:$0 sm:$0xff] }
  0x2b   : > { %974 = vmatpush.bf16.msrb.mxu0 %v1381_v30 }
  0x2c   : > { %573 = vmatpush.bf16.msrb.mxu1 %v1381_v30  ;;  %1071 = vmatpush.bf16.msrb.mxu2 %v1385_v24 }
  0x2e   : > { %1285 = vmatmul.msk.bf16.gmra.mxu0 %vm416_vm0, %v394_v8 }
  0x2f   : > { %1291 = vmatmul.msk.bf16.gmra.mxu1 %vm416_vm0, %v400_v23 }
  0x3e   : > { %1286 = vmatmul.msk.bf16.gmra.mxu0 %vm416_vm0, %v395_v11 }
  0x4e   : > { %1287 = vmatmul.msk.bf16.gmra.mxu0 %vm416_vm0, %v396_v14 }
  0x5e   : > { %1288 = vmatmul.msk.bf16.gmra.mxu0 %vm416_vm0, %v397_v20 }
  0x6e   : > { %1289 = vmatmul.msk.bf16.gmra.mxu0 %vm416_vm0, %v398_v26 }
  0x9b   : > { %v450_v31 = vpop.f32.mrf.mxu0 }
  0x9c   : > { %v451_v33 = vadd.f32 %v1666_v32, %v450_v31  ;;  %v480_v6 = vpop.f32.mrf.mxu1 }
  0x9d   : > { %v481_v14 = vadd.f32 %v1666_v32, %v480_v6 }
  0x9e   : > { %v490_v36 = vmax.f32 %v451_v33, 0.0 }
  0x9f   : > { %v502_v17 = vmax.f32 %v481_v14, 0.0 }
  0xa3   : > { %v452_v34 = vpop.f32.mrf.mxu0 }
  0xa4   : > { %v453_v35 = vadd.f32 %v1666_v32, %v452_v34  ;;  %v482_v13 = vpop.f32.mrf.mxu1 }
  0xa5   : > { %v483_v15 = vadd.f32 %v1666_v32, %v482_v13 }
  0xa6   : > { %v491_v37 = vmax.f32 %v453_v35, 0.0 }
  0xa7   : > { %v503_v18 = vmax.f32 %v483_v15, 0.0 }
  0xa8   : > { %v506_v38 = vpack.c.bf16 %v491_v37, %v490_v36 }
  0xa9   : > { %v512_v19 = vpack.c.bf16 %v503_v18, %v502_v17 }
  0xaa   : > { %1308 = vmatmul.msk.bf16.vlgmr.msrb.gmra.mxu1 %vm541_vm1, %v506_v38 }
  0xab   : > { %v455_v39 = vpop.f32.mrf.mxu0 }
  0xac   : > { %v456_v40 = vadd.f32 %v1666_v32, %v455_v39  ;;  %v485_v16 = vpop.f32.mrf.mxu1 }
  0xad   : > { %v486_v22 = vadd.f32 %v1666_v32, %v485_v16 }
  0xae   : > { %v492_v43 = vmax.f32 %v456_v40, 0.0 }
  0xaf   : > { %v504_v25 = vmax.f32 %v486_v22, 0.0 }
  0xb3   : > { %v457_v41 = vpop.f32.mrf.mxu0 }
  0xb4   : > { %v458_v42 = vadd.f32 %v1666_v32, %v457_v41  ;;  %v487_v20 = vpop.f32.mrf.mxu1 }
  0xb5   : > { %v488_v23 = vadd.f32 %v1666_v32, %v487_v20 }
  0xb6   : > { %v493_v44 = vmax.f32 %v458_v42, 0.0 }
  0xb7   : > { %v505_v26 = vmax.f32 %v488_v23, 0.0 }
  0xb8   : > { %v507_v45 = vpack.c.bf16 %v493_v44, %v492_v43 }
  0xb9   : > { %v513_v27 = vpack.c.bf16 %v505_v26, %v504_v25 }
  0xba   : > { %1309 = vmatmul.msk.bf16.gmra.mxu1 %vm541_vm1, %v507_v45 }
  0xbb   : > { %v460_v46 = vpop.f32.mrf.mxu0 }
  0xbc   : > { %v461_v47 = vadd.f32 %v1666_v32, %v460_v46 }
  0xbe   : > { %v494_v50 = vmax.f32 %v461_v47, 0.0 }
  0xc3   : > { %v462_v48 = vpop.f32.mrf.mxu0 }
  0xc4   : > { %v463_v49 = vadd.f32 %v1666_v32, %v462_v48 }
  0xc6   : > { %v495_v51 = vmax.f32 %v463_v49, 0.0 }
  0xc8   : > { %v508_v52 = vpack.c.bf16 %v495_v51, %v494_v50 }
  0xca   : > { %1310 = vmatmul.msk.bf16.gmra.mxu1 %vm541_vm1, %v508_v52 }
  0xcb   : > { %v465_v53 = vpop.f32.mrf.mxu0 }
  0xcc   : > { %v466_v54 = vadd.f32 %v1666_v32, %v465_v53 }
  0xce   : > { %v496_v57 = vmax.f32 %v466_v54, 0.0 }
  0xd3   : > { %v467_v55 = vpop.f32.mrf.mxu0 }
  0xd4   : > { %v468_v56 = vadd.f32 %v1666_v32, %v467_v55 }
  0xd6   : > { %v497_v58 = vmax.f32 %v468_v56, 0.0 }
  0xd8   : > { %v509_v59 = vpack.c.bf16 %v497_v58, %v496_v57 }
  0xda   : > { %1311 = vmatmul.msk.bf16.gmra.mxu1 %vm541_vm1, %v509_v59 }
  0xdb   : > { %v470_v60 = vpop.f32.mrf.mxu0 }
  0xdc   : > { %v471_v61 = vadd.f32 %v1666_v32, %v470_v60 }
  0xde   : > { %v498_v0 = vmax.f32 %v471_v61, 0.0 }
  0xe3   : > { %v472_v62 = vpop.f32.mrf.mxu0 }
  0xe4   : > { %v473_v63 = vadd.f32 %v1666_v32, %v472_v62 }
  0xe6   : > { %v499_v3 = vmax.f32 %v473_v63, 0.0 }
  0xe8   : > { %v510_v4 = vpack.c.bf16 %v499_v3, %v498_v0 }
  0xea   : > { %1312 = vmatmul.msk.bf16.gmra.mxu1 %vm541_vm1, %v510_v4 }
  0xeb   : > { %v475_v5 = vpop.f32.mrf.mxu0 }
  0xec   : > { %v476_v7 = vadd.f32 %v1666_v32, %v475_v5 }
  0xee   : > { %v500_v10 = vmax.f32 %v476_v7, 0.0 }
  0xf3   : > { %v477_v8 = vpop.f32.mrf.mxu0 }
  0xf4   : > { %v478_v9 = vadd.f32 %v1666_v32, %v477_v8 }
  0xf6   : > { %v501_v11 = vmax.f32 %v478_v9, 0.0 }
  0xf8   : > { %v511_v12 = vpack.c.bf16 %v501_v11, %v500_v10 }
  0xfa   : > { %1313 = vmatmul.msk.bf16.gmra.mxu1 %vm541_vm1, %v511_v12 }
 0x10a   : > { %1314 = vmatmul.msk.bf16.gmra.mxu1 %vm541_vm1, %v512_v19 }
 0x11a   : > { %1315 = vmatmul.msk.bf16.gmra.mxu1 %vm541_vm1, %v513_v27 }
 0x127   : > { %v575_v28 = vpop.f32.mrf.mxu1 }
 0x128   : > { %v576_v30 = vadd.f32 %v1701_v29, %v575_v28 }
 0x12a   : > { %v615_v34 = vmax.f32 %v576_v30, 0.0 }
 0x12f   : > { %v577_v31 = vpop.f32.mrf.mxu1 }
 0x130   : > { %v578_v33 = vadd.f32 %v1701_v29, %v577_v31 }
 0x132   : > { %v616_v35 = vmax.f32 %v578_v33, 0.0 }
 0x134   : > { %v631_v36 = vpack.c.bf16 %v616_v35, %v615_v34  ;;  %v1734_v35 = vld [vmem:[%s1934_s6] ss:$0 sm:$0xff] }
 0x136   : > { %1324 = vmatmul.msk.bf16.vlgmr.msra.gmra.mxu2 %vm416_vm0, %v631_v36 }
 0x137   : > { %v580_v37 = vpop.f32.mrf.mxu1 }
 0x138   : > { %v581_v38 = vadd.f32 %v1701_v29, %v580_v37 }
 0x13a   : > { %v617_v41 = vmax.f32 %v581_v38, 0.0 }
 0x13f   : > { %v582_v39 = vpop.f32.mrf.mxu1 }
 0x140   : > { %v583_v40 = vadd.f32 %v1701_v29, %v582_v39 }
 0x142   : > { %v618_v42 = vmax.f32 %v583_v40, 0.0 }
 0x144   : > { %v632_v43 = vpack.c.bf16 %v618_v42, %v617_v41 }
 0x146   : > { %1325 = vmatmul.msk.bf16.gmra.mxu2 %vm416_vm0, %v632_v43 }
 0x147   : > { %v585_v44 = vpop.f32.mrf.mxu1 }
 0x148   : > { %v586_v45 = vadd.f32 %v1701_v29, %v585_v44 }
 0x14a   : > { %v619_v48 = vmax.f32 %v586_v45, 0.0 }
 0x14f   : > { %v587_v46 = vpop.f32.mrf.mxu1 }
 0x150   : > { %v588_v47 = vadd.f32 %v1701_v29, %v587_v46 }
 0x152   : > { %v620_v49 = vmax.f32 %v588_v47, 0.0 }
 0x154   : > { %v633_v50 = vpack.c.bf16 %v620_v49, %v619_v48 }
 0x156   : > { %1326 = vmatmul.msk.bf16.gmra.mxu2 %vm416_vm0, %v633_v50 }
 0x157   : > { %v590_v51 = vpop.f32.mrf.mxu1 }
 0x158   : > { %v591_v52 = vadd.f32 %v1701_v29, %v590_v51 }
 0x15a   : > { %v621_v55 = vmax.f32 %v591_v52, 0.0 }
 0x15f   : > { %v592_v53 = vpop.f32.mrf.mxu1 }
 0x160   : > { %v593_v54 = vadd.f32 %v1701_v29, %v592_v53 }
 0x162   : > { %v622_v56 = vmax.f32 %v593_v54, 0.0 }
 0x164   : > { %v634_v57 = vpack.c.bf16 %v622_v56, %v621_v55 }
 0x166   : > { %1327 = vmatmul.msk.bf16.gmra.mxu2 %vm416_vm0, %v634_v57 }
 0x167   : > { %v595_v58 = vpop.f32.mrf.mxu1 }
 0x168   : > { %v596_v59 = vadd.f32 %v1701_v29, %v595_v58 }
 0x16a   : > { %v623_v62 = vmax.f32 %v596_v59, 0.0 }
 0x16f   : > { %v597_v60 = vpop.f32.mrf.mxu1 }
 0x170   : > { %v598_v61 = vadd.f32 %v1701_v29, %v597_v60 }
 0x172   : > { %v624_v63 = vmax.f32 %v598_v61, 0.0 }
 0x174   : > { %v635_v0 = vpack.c.bf16 %v624_v63, %v623_v62 }
 0x176   : > { %1328 = vmatmul.msk.bf16.gmra.mxu2 %vm416_vm0, %v635_v0 }
 0x177   : > { %v600_v3 = vpop.f32.mrf.mxu1 }
 0x178   : > { %v601_v4 = vadd.f32 %v1701_v29, %v600_v3 }
 0x17a   : > { %v625_v7 = vmax.f32 %v601_v4, 0.0 }
 0x17f   : > { %v602_v5 = vpop.f32.mrf.mxu1 }
 0x180   : > { %v603_v6 = vadd.f32 %v1701_v29, %v602_v5 }
 0x182   : > { %v626_v8 = vmax.f32 %v603_v6, 0.0 }
 0x184   : > { %v636_v9 = vpack.c.bf16 %v626_v8, %v625_v7 }
 0x186   : > { %1329 = vmatmul.msk.bf16.gmra.mxu2 %vm416_vm0, %v636_v9 }
 0x187   : > { %v605_v10 = vpop.f32.mrf.mxu1 }
 0x188   : > { %v606_v11 = vadd.f32 %v1701_v29, %v605_v10 }
 0x18a   : > { %v627_v14 = vmax.f32 %v606_v11, 0.0 }
 0x18f   : > { %v607_v12 = vpop.f32.mrf.mxu1 }
 0x190   : > { %v608_v13 = vadd.f32 %v1701_v29, %v607_v12 }
 0x192   : > { %v628_v15 = vmax.f32 %v608_v13, 0.0 }
 0x194   : > { %v637_v16 = vpack.c.bf16 %v628_v15, %v627_v14  ;;  %v376_v14 = vld [vmem:[#allocation2] sm:$0x1]  ;;  %v1505_v15 = vmov 0  }
 0x195   : > { %1429 = vset.pattern.permute.xlu0 %v1505_v15 }
 0x196   : > { %1330 = vmatmul.msk.bf16.gmra.mxu2 %vm416_vm0, %v637_v16  ;;  %753 = vperm.xlu0 %1429, %v376_v14  }
 0x197   : > { %v610_v17 = vpop.f32.mrf.mxu1 }
 0x198   : > { %v611_v18 = vadd.f32 %v1701_v29, %v610_v17 }
 0x19a   : > { %v629_v21 = vmax.f32 %v611_v18, 0.0 }
 0x19f   : > { %v612_v19 = vpop.f32.mrf.mxu1 }
 0x1a0   : > { %v613_v20 = vadd.f32 %v1701_v29, %v612_v19 }
 0x1a2   : > { %v630_v22 = vmax.f32 %v613_v20, 0.0 }
 0x1a4   : > { %v638_v23 = vpack.c.bf16 %v630_v22, %v629_v21 }
 0x1a6   : > { %1331 = vmatmul.msk.bf16.gmra.mxu2 %vm416_vm0, %v638_v23 }
 0x1b9   : > { %v1727_v24 = vpop.f32.mrf.mxu2 }
 0x1c1   : > { %v1729_v25 = vpop.f32.mrf.mxu2 }
 0x1c2   : > { %v690_v23 = vadd.f32 %v1734_v35, %v1729_v25  ;;  %v1333_v25 = vld [vmem:[%s1624_s30 + $0x80] sm:$0xff] }
 0x1c9   : > { %v692_v26 = vpop.f32.mrf.mxu2 }
 0x1ca   : > { %v693_v19 = vadd.f32 %v1734_v35, %v692_v26 }
 0x1cc   : > { %v729_v22 = vmax.f32 %v693_v19, 0.0 }
 0x1d1   : > { %v694_v27 = vpop.f32.mrf.mxu2 }
 0x1d2   : > { %v695_v17 = vadd.f32 %v1734_v35, %v694_v27 }
 0x1d4   : > { %v730_v20 = vmax.f32 %v695_v17, 0.0 }
 0x1d9   : > { %v697_v28 = vpop.f32.mrf.mxu2 }
 0x1da   : > { %v698_v11 = vadd.f32 %v1734_v35, %v697_v28  ;;  %v744_v28 = vpack.c.bf16 %v730_v20, %v729_v22 }
 0x1dc   : > { %v731_v16 = vmax.f32 %v698_v11, 0.0  ;;  %v765_v27 = vsel %vm757_vm2, %v744_v28, 0 }
 0x1e1   : > { %v699_v30 = vpop.f32.mrf.mxu2 }
 0x1e2   : > { %v700_v9 = vadd.f32 %v1734_v35, %v699_v30  ;;  %v688_v30 = vadd.f32 %v1734_v35, %v1727_v24  ;;  %v1766_v24 = vld [vmem:[%s1935_s7] sm:$0x1] }
 0x1e4   : > { %v732_v12 = vmax.f32 %v700_v9, 0.0  ;;  %v727_v26 = vmax.f32 %v688_v30, 0.0 }
 0x1e6   : > { %v745_v18 = vpack.c.bf16 %v732_v12, %v731_v16 }
 0x1e8   : > { %v768_v21 = vsel %vm757_vm2, %v745_v18, 0 }
 0x1e9   : > { %v702_v31 = vpop.f32.mrf.mxu2 }
 0x1ea   : > { %v703_v5 = vadd.f32 %v1734_v35, %v702_v31  ;;  %v728_v31 = vmax.f32 %v690_v23, 0.0 }
 0x1ec   : > { %v733_v8 = vmax.f32 %v703_v5, 0.0 }
 0x1f1   : > { %v704_v33 = vpop.f32.mrf.mxu2 }
 0x1f2   : > { %v705_v4 = vadd.f32 %v1734_v35, %v704_v33  ;;  %v743_v33 = vpack.c.bf16 %v728_v31, %v727_v26 }
 0x1f4   : > { %v734_v6 = vmax.f32 %v705_v4, 0.0 }
 0x1f6   : > { %v746_v10 = vpack.c.bf16 %v734_v6, %v733_v8 }
 0x1f8   : > { %v771_v13 = vsel %vm757_vm2, %v746_v10, 0 }
 0x1f9   : > { %v707_v34 = vpop.f32.mrf.mxu2 }
 0x1fa   : > { %v708_v36 = vadd.f32 %v1734_v35, %v707_v34  ;;  %v762_v34 = vsel %vm757_vm2, %v743_v33, 0 }
 0x1fc   : > { %v735_v39 = vmax.f32 %v708_v36, 0.0  ;;  %v1334_v36 = vld [vmem:[%s1624_s30 + $0x88] sm:$0xff] }
 0x201   : > { %v709_v37 = vpop.f32.mrf.mxu2 }
 0x202   : > { %v710_v38 = vadd.f32 %v1734_v35, %v709_v37  ;;  %v838_v37 = vpack.c.bf16 %v1334_v36, %v1333_v25 }
 0x204   : > { %v736_v40 = vmax.f32 %v710_v38, 0.0  ;;  %v1336_v38 = vld [vmem:[%s1624_s30 + $0x98] sm:$0xff] }
 0x206   : > { %v747_v41 = vpack.c.bf16 %v736_v40, %v735_v39  ;;  %v1337_v40 = vld [vmem:[%s1624_s30 + $0xa0] sm:$0xff] }
 0x208   : > { %v774_v7 = vsel %vm757_vm2, %v747_v41, 0 }
 0x209   : > { %v712_v42 = vpop.f32.mrf.mxu2 }
 0x20a   : > { %v713_v60 = vadd.f32 %v1734_v35, %v712_v42  ;;  %v1339_v42 = vld [vmem:[%s1624_s30 + $0xb0] sm:$0xff] }
 0x20c   : > { %v737_v63 = vmax.f32 %v713_v60, 0.0 }
 0x211   : > { %v714_v43 = vpop.f32.mrf.mxu2 }
 0x212   : > { %v715_v58 = vadd.f32 %v1734_v35, %v714_v43  ;;  %v1340_v43 = vld [vmem:[%s1624_s30 + $0xb8] sm:$0xff] }
 0x214   : > { %v738_v61 = vmax.f32 %v715_v58, 0.0 }
 0x216   : > { %v748_v0 = vpack.c.bf16 %v738_v61, %v737_v63 }
 0x218   : > { %v777_v3 = vsel %vm757_vm2, %v748_v0, 0 }
 0x219   : > { %v717_v44 = vpop.f32.mrf.mxu2 }
 0x21a   : > { %v718_v53 = vadd.f32 %v1734_v35, %v717_v44  ;;  %v841_v44 = vpack.c.bf16 %v1340_v43, %v1339_v42 }
 0x21c   : > { %v739_v57 = vmax.f32 %v718_v53, 0.0 }
 0x221   : > { %v719_v45 = vpop.f32.mrf.mxu2 }
 0x222   : > { %v720_v50 = vadd.f32 %v1734_v35, %v719_v45  ;;  %v1341_v45 = vld [vmem:[%s1624_s30 + $0xc0] sm:$0xff] }
 0x224   : > { %v740_v55 = vmax.f32 %v720_v50, 0.0 }
 0x226   : > { %v749_v59 = vpack.c.bf16 %v740_v55, %v739_v57  ;;  %v1348_v55 = vld [vmem:[%s1624_s30 + $0xf8] sm:$0xff]  ;;  %v1794_v57 = vpop.permute.xlu0 %753 }
 0x227   : > { %v756_v58 = vperm.slane %v1794_v57, 0 }
 0x228   : > { %v780_v62 = vsel %vm757_vm2, %v749_v59, 0 }
 0x229   : > { %v722_v46 = vpop.f32.mrf.mxu2 }
 0x22a   : > { %v723_v47 = vadd.f32 %v1734_v35, %v722_v46  ;;  %v1342_v46 = vld [vmem:[%s1624_s30 + $0xc8] sm:$0xff] }
 0x22c   : > { %v741_v51 = vmax.f32 %v723_v47, 0.0  ;;  %v842_v47 = vpack.c.bf16 %v1342_v46, %v1341_v45 }
 0x231   : > { %v724_v48 = vpop.f32.mrf.mxu2 }
 0x232   : > { %v725_v49 = vadd.f32 %v1734_v35, %v724_v48  ;;  %v1343_v48 = vld [vmem:[%s1624_s30 + $0xd0] sm:$0xff] }
 0x234   : > { %v742_v52 = vmax.f32 %v725_v49, 0.0  ;;  %v1344_v49 = vld [vmem:[%s1624_s30 + $0xd8] sm:$0xff] }
 0x235   : > { %v843_v50 = vpack.c.bf16 %v1344_v49, %v1343_v48 }
 0x236   : > { %v750_v54 = vpack.c.bf16 %v742_v52, %v741_v51  ;;  %v1345_v51 = vld [vmem:[%s1624_s30 + $0xe0] sm:$0xff]  ;;  %v1346_v52 = vld [vmem:[%s1624_s30 + $0xe8] sm:$0xff] }
 0x237   : > { %v844_v53 = vpack.c.bf16 %v1346_v52, %v1345_v51 }
 0x238   : > { %v783_v56 = vsel %vm757_vm2, %v750_v54, 0  ;;  %v1347_v54 = vld [vmem:[%s1624_s30 + $0xf0] sm:$0xff] }
 0x239   : > { %785 = vmatpush.bf16.xpose.msra.mxu3 %v783_v56  ;;  %v845_v56 = vpack.c.bf16 %v1348_v55, %v1347_v54 }
 0x241   : > { %786 = vmatpush.bf16.xpose.msra.mxu3 %v780_v62 }
 0x249   : > { %787 = vmatpush.bf16.xpose.msra.mxu3 %v777_v3 }
 0x251   : > { %788 = vmatpush.bf16.xpose.msra.mxu3 %v774_v7 }
 0x259   : > { %789 = vmatpush.bf16.xpose.msra.mxu3 %v771_v13  ;;  %v816_v13 = vlaneseq }
 0x25b   : > { %vm1805_vm6 = vcmp.lt.s32.totalorder %v816_v13, 128 }
 0x261   : > { %790 = vmatpush.bf16.xpose.msra.mxu3 %v768_v21 }
 0x269   : > { %791 = vmatpush.bf16.xpose.msra.mxu3 %v765_v27 }
 0x271   : > { %792 = vmatpush.bf16.xpose.msra.mxu3 %v762_v34 }
 0x278   : > { %1332 = vmatmul.msk.bf16.vlgmr.msra.gmra.mxu3 %vm757_vm2, %v1766_v24 }
 0x279   : > { %876 = vmatpush.bf16.msrb.mxu3 %v1610_v1  ;;  %v1335_v1 = vld [vmem:[%s1624_s30 + $0x90] sm:$0xff] }
 0x27a   : > { %v839_v39 = vpack.c.bf16 %v1336_v38, %v1335_v1 }
 0x27d   : > { %877 = vmatpush.bf16.msrb.mxu3 %v1617_v2  ;;  %v1338_v2 = vld [vmem:[%s1624_s30 + $0xa8] sm:$0xff]  ;;  %s338_s30 = sand.u32 1, %s1495_s12  }
 0x27e   : > { %v840_v41 = vpack.c.bf16 %v1338_v2, %v1337_v40  ;;  %s1273_s26 = sshll.u32 %s338_s30, 1  ;;  %s1195_s8 = scalar_lea.sflag [#allocation4], %s338_s30 }
 0x27f   : > { %s1810_s27 = scalar_lea.vmem [#allocation3], %s1273_s26  ;;  %s1461_s26 = scalar_lea.hbm %s1937_s9, 4 }
 0x280   : > { %s1207_s17 = sshll.u32 %s1810_s27, 4  ;;  %p1463_p1 = scmp.lt.s32.totalorder %s1461_s26, %s1457_s23  ;;  %s1208_s17 = int_to_ptr.vmem [resolvable:$true] %s1207_s17 }
 0x282   : > { %p1464_p2 = por %p1463_p1, %p1462_p0 }
 0x284   : > { %p1465_p3 = pnand %p1464_p2, %p1460_p13 }
 0x288   : > { %1349 = vmatmul.msk.bf16.vlgmr.msrb.gmra.mxu3 %vm416_vm0, %v838_v37 }
 0x298   : > { %1350 = vmatmul.msk.bf16.gmra.mxu3 %vm416_vm0, %v839_v39 }
 0x2a8   : > { %1351 = vmatmul.msk.bf16.gmra.mxu3 %vm416_vm0, %v840_v41 }
 0x2b8   : > { %1352 = vmatmul.msk.bf16.gmra.mxu3 %vm416_vm0, %v841_v44 }
 0x2c8   : > { %1353 = vmatmul.msk.bf16.gmra.mxu3 %vm416_vm0, %v842_v47 }
 0x2d8   : > { %1354 = vmatmul.msk.bf16.gmra.mxu3 %vm416_vm0, %v843_v50 }
 0x2e8   : > { %1355 = vmatmul.msk.bf16.gmra.mxu3 %vm416_vm0, %v844_v53 }
 0x2f8   : > { %1356 = vmatmul.msk.bf16.gmra.mxu3 %vm416_vm0, %v845_v56 }
 0x2fb   : > { %v794_v59 = vpop.f32.mrf.mxu3 }
 0x2fc   : > { %v795_v60 = vadd.f32 %v794_v59, %v756_v58 }
 0x2fe   : > { %v798_v61 = vsub.f32 0.0, %v795_v60 }
 0x300   : > { %v799_v62 = vmul.f32 1.442695, %v798_v61 }
 0x302   : > { %1433 = vpow2.f32 %v799_v62 }
 0x303   : > { %v796_v63 = vpop.f32.mrf.mxu3 }
 0x308   : > { %v1434_v0 = vpop.eup %1433 }
 0x309   : > { %v801_v3 = vadd.f32 1.0, %v1434_v0 }
 0x30b   : > { %1435 = vrcp.f32 %v801_v3  ;;  %v879_v4 = vpop.f32.mrf.mxu3  ;;  %v811_v11 = vand.u32 2147483647, %v801_v3  ;;  %v813_v12 = vand.u32 2147483648, %v801_v3  ;;  %vm807_vm4 = vweird.f32 %v801_v3 }
 0x30c   : > { %v880_v7 = vadd.f32 %v1666_v32, %v879_v4 }
 0x30d   : > { %v814_v19 = vor.u32 1.1754944e-38, %v813_v12  ;;  %vm812_vm7 = vcmp.eq.f32.partialorder %v811_v11, 8.507059e+37 }
 0x30e   : > { %v919_v14 = vmax.f32 %v880_v7, 0.0 }
 0x311   : > { %v1436_v5 = vpop.eup %1435 }
 0x312   : > { %v803_v6 = vmul.f32 %v1436_v5, %v801_v3  ;;  %vm808_vm3 = vweird.f32 %v1436_v5 }
 0x313   : > { %v881_v8 = vpop.f32.mrf.mxu3  ;;  %vm809_vm5 = vmor %vm807_vm4, %vm808_vm3 }
 0x314   : > { %v804_v9 = vsub.f32 1.0, %v803_v6  ;;  %v882_v10 = vadd.f32 %v1666_v32, %v881_v8 }
 0x316   : > { %v920_v15 = vmax.f32 %v882_v10, 0.0  ;;  %v805_v16 = vmul.f32 %v1436_v5, %v804_v9 }
 0x318   : > { %v935_v17 = vpack.c.bf16 %v920_v15, %v919_v14  ;;  %v806_v18 = vadd.f32 %v1436_v5, %v805_v16 }
 0x31a   : > { %1357 = vmatmul.msk.bf16.vlgmr.msrb.gmra.mxu0 %vm541_vm1, %v935_v17  ;;  %v810_v21 = vsel %vm809_vm5, %v1436_v5, %v806_v18 }
 0x31b   : > { %v884_v22 = vpop.f32.mrf.mxu3  ;;  %v815_v23 = vsel %vm812_vm7, %v814_v19, %v810_v21 }
 0x31c   : > { %820 = vst.msk [vmem:[%s1810_s27] sm:$0x1] %vm1805_vm6, %v815_v23  ;;  %v885_v28 = vadd.f32 %v1666_v32, %v884_v22 }
 0x31e   : > { %v921_v27 = vmax.f32 %v885_v28, 0.0 }
 0x323   : > { %v886_v30 = vpop.f32.mrf.mxu3 }
 0x324   : > { %v887_v31 = vadd.f32 %v1666_v32, %v886_v30 }
 0x326   : > { %v922_v26 = vmax.f32 %v887_v31, 0.0 }
 0x328   : > { %v936_v33 = vpack.c.bf16 %v922_v26, %v921_v27 }
 0x32a   : > { %1358 = vmatmul.msk.bf16.gmra.mxu0 %vm541_vm1, %v936_v33 }
 0x32b   : > { %v889_v34 = vpop.f32.mrf.mxu3 }
 0x32c   : > { %v890_v25 = vadd.f32 %v1666_v32, %v889_v34 }
 0x32e   : > { %v923_v1 = vmax.f32 %v890_v25, 0.0 }
 0x333   : > { %v891_v36 = vpop.f32.mrf.mxu3 }
 0x334   : > { %v892_v37 = vadd.f32 %v1666_v32, %v891_v36 }
 0x336   : > { %v924_v38 = vmax.f32 %v892_v37, 0.0 }
 0x338   : > { %v937_v39 = vpack.c.bf16 %v924_v38, %v923_v1 }
 0x33a   : > { %1359 = vmatmul.msk.bf16.gmra.mxu0 %vm541_vm1, %v937_v39 }
 0x33b   : > { %v894_v40 = vpop.f32.mrf.mxu3 }
 0x33c   : > { %v895_v2 = vadd.f32 %v1666_v32, %v894_v40 }
 0x33e   : > { %v925_v43 = vmax.f32 %v895_v2, 0.0 }
 0x343   : > { %v896_v41 = vpop.f32.mrf.mxu3 }
 0x344   : > { %v897_v42 = vadd.f32 %v1666_v32, %v896_v41 }
 0x346   : > { %v926_v44 = vmax.f32 %v897_v42, 0.0 }
 0x348   : > { %v938_v45 = vpack.c.bf16 %v926_v44, %v925_v43 }
 0x34a   : > { %1360 = vmatmul.msk.bf16.gmra.mxu0 %vm541_vm1, %v938_v45 }
 0x34b   : > { %v899_v46 = vpop.f32.mrf.mxu3 }
 0x34c   : > { %v900_v47 = vadd.f32 %v1666_v32, %v899_v46 }
 0x34e   : > { %v927_v50 = vmax.f32 %v900_v47, 0.0 }
 0x353   : > { %v901_v48 = vpop.f32.mrf.mxu3 }
 0x354   : > { %v902_v49 = vadd.f32 %v1666_v32, %v901_v48 }
 0x356   : > { %v928_v51 = vmax.f32 %v902_v49, 0.0 }
 0x358   : > { %v939_v52 = vpack.c.bf16 %v928_v51, %v927_v50 }
 0x35a   : > { %1361 = vmatmul.msk.bf16.gmra.mxu0 %vm541_vm1, %v939_v52 }
 0x35b   : > { %v904_v53 = vpop.f32.mrf.mxu3 }
 0x35c   : > { %v905_v54 = vadd.f32 %v1666_v32, %v904_v53 }
 0x35e   : > { %v929_v59 = vmax.f32 %v905_v54, 0.0 }
 0x363   : > { %v906_v55 = vpop.f32.mrf.mxu3 }
 0x364   : > { %v907_v56 = vadd.f32 %v1666_v32, %v906_v55 }
 0x366   : > { %v930_v60 = vmax.f32 %v907_v56, 0.0 }
 0x368   : > { %v940_v61 = vpack.c.bf16 %v930_v60, %v929_v59 }
 0x36a   : > { %1362 = vmatmul.msk.bf16.gmra.mxu0 %vm541_vm1, %v940_v61 }
 0x36b   : > { %v909_v62 = vpop.f32.mrf.mxu3 }
 0x36c   : > { %v910_v63 = vadd.f32 %v1666_v32, %v909_v62 }
 0x36e   : > { %v931_v4 = vmax.f32 %v910_v63, 0.0 }
 0x373   : > { %v911_v0 = vpop.f32.mrf.mxu3 }
 0x374   : > { %v912_v3 = vadd.f32 %v1666_v32, %v911_v0 }
 0x376   : > { %v932_v5 = vmax.f32 %v912_v3, 0.0 }
 0x378   : > { %v941_v6 = vpack.c.bf16 %v932_v5, %v931_v4 }
 0x37a   : > { %1363 = vmatmul.msk.bf16.gmra.mxu0 %vm541_vm1, %v941_v6 }
 0x37b   : > { %v914_v7 = vpop.f32.mrf.mxu3 }
 0x37c   : > { %v915_v8 = vadd.f32 %v1666_v32, %v914_v7 }
 0x37e   : > { %v933_v11 = vmax.f32 %v915_v8, 0.0 }
 0x383   : > { %v916_v9 = vpop.f32.mrf.mxu3 }
 0x384   : > { %v917_v10 = vadd.f32 %v1666_v32, %v916_v9 }
 0x386   : > { %v934_v12 = vmax.f32 %v917_v10, 0.0 }
 0x388   : > { %v942_v13 = vpack.c.bf16 %v934_v12, %v933_v11 }
 0x38a   : > { %1364 = vmatmul.msk.bf16.gmra.mxu0 %vm541_vm1, %v942_v13 }
 0x397   : > { %v976_v14 = vpop.f32.mrf.mxu0 }
 0x398   : > { %v977_v15 = vadd.f32 %v1701_v29, %v976_v14 }
 0x39a   : > { %v1016_v18 = vmax.f32 %v977_v15, 0.0 }
 0x39f   : > { %v978_v16 = vpop.f32.mrf.mxu0 }
 0x3a0   : > { %v979_v17 = vadd.f32 %v1701_v29, %v978_v16 }
 0x3a2   : > { %v1017_v19 = vmax.f32 %v979_v17, 0.0 }
 0x3a4   : > { %v1032_v21 = vpack.c.bf16 %v1017_v19, %v1016_v18 }
 0x3a6   : > { %1365 = vmatmul.msk.bf16.vlgmr.msrb.gmra.mxu2 %vm416_vm0, %v1032_v21 }
 0x3a7   : > { %v981_v22 = vpop.f32.mrf.mxu0 }
 0x3a8   : > { %v982_v23 = vadd.f32 %v1701_v29, %v981_v22 }
 0x3aa   : > { %v1018_v30 = vmax.f32 %v982_v23, 0.0 }
 0x3af   : > { %v983_v32 = vpop.f32.mrf.mxu0 }
 0x3b0   : > { %v984_v28 = vadd.f32 %v1701_v29, %v983_v32 }
 0x3b2   : > { %v1019_v31 = vmax.f32 %v984_v28, 0.0 }
 0x3b4   : > { %v1033_v27 = vpack.c.bf16 %v1019_v31, %v1018_v30 }
 0x3b6   : > { %1366 = vmatmul.msk.bf16.gmra.mxu2 %vm416_vm0, %v1033_v27 }
 0x3b7   : > { %v986_v26 = vpop.f32.mrf.mxu0 }
 0x3b8   : > { %v987_v33 = vadd.f32 %v1701_v29, %v986_v26 }
 0x3ba   : > { %v1020_v36 = vmax.f32 %v987_v33, 0.0 }
 0x3bf   : > { %v988_v34 = vpop.f32.mrf.mxu0 }
 0x3c0   : > { %v989_v25 = vadd.f32 %v1701_v29, %v988_v34 }
 0x3c2   : > { %v1021_v37 = vmax.f32 %v989_v25, 0.0 }
 0x3c4   : > { %v1034_v1 = vpack.c.bf16 %v1021_v37, %v1020_v36 }
 0x3c6   : > { %1367 = vmatmul.msk.bf16.gmra.mxu2 %vm416_vm0, %v1034_v1 }
 0x3c7   : > { %v991_v38 = vpop.f32.mrf.mxu0 }
 0x3c8   : > { %v992_v39 = vadd.f32 %v1701_v29, %v991_v38 }
 0x3ca   : > { %v1022_v41 = vmax.f32 %v992_v39, 0.0 }
 0x3cf   : > { %v993_v40 = vpop.f32.mrf.mxu0 }
 0x3d0   : > { %v994_v2 = vadd.f32 %v1701_v29, %v993_v40 }
 0x3d2   : > { %v1023_v42 = vmax.f32 %v994_v2, 0.0 }
 0x3d4   : > { %v1035_v43 = vpack.c.bf16 %v1023_v42, %v1022_v41 }
 0x3d6   : > { %1368 = vmatmul.msk.bf16.gmra.mxu2 %vm416_vm0, %v1035_v43 }
 0x3d7   : > { %v996_v44 = vpop.f32.mrf.mxu0 }
 0x3d8   : > { %v997_v45 = vadd.f32 %v1701_v29, %v996_v44 }
 0x3da   : > { %v1024_v48 = vmax.f32 %v997_v45, 0.0 }
 0x3df   : > { %v998_v46 = vpop.f32.mrf.mxu0 }
 0x3e0   : > { %v999_v47 = vadd.f32 %v1701_v29, %v998_v46 }
 0x3e2   : > { %v1025_v49 = vmax.f32 %v999_v47, 0.0 }
 0x3e4   : > { %v1036_v50 = vpack.c.bf16 %v1025_v49, %v1024_v48 }
 0x3e6   : > { %1369 = vmatmul.msk.bf16.gmra.mxu2 %vm416_vm0, %v1036_v50 }
 0x3e7   : > { %v1001_v51 = vpop.f32.mrf.mxu0 }
 0x3e8   : > { %v1002_v52 = vadd.f32 %v1701_v29, %v1001_v51 }
 0x3ea   : > { %v1026_v55 = vmax.f32 %v1002_v52, 0.0 }
 0x3ef   : > { %v1003_v53 = vpop.f32.mrf.mxu0 }
 0x3f0   : > { %v1004_v54 = vadd.f32 %v1701_v29, %v1003_v53 }
 0x3f2   : > { %v1027_v56 = vmax.f32 %v1004_v54, 0.0 }
 0x3f4   : > { %v1037_v59 = vpack.c.bf16 %v1027_v56, %v1026_v55 }
 0x3f6   : > { %1370 = vmatmul.msk.bf16.gmra.mxu2 %vm416_vm0, %v1037_v59 }
 0x3f7   : > { %v1006_v60 = vpop.f32.mrf.mxu0 }
 0x3f8   : > { %v1007_v61 = vadd.f32 %v1701_v29, %v1006_v60 }
 0x3fa   : > { %v1028_v0 = vmax.f32 %v1007_v61, 0.0 }
 0x3ff   : > { %v1008_v62 = vpop.f32.mrf.mxu0 }
 0x400   : > { %v1009_v63 = vadd.f32 %v1701_v29, %v1008_v62 }
 0x402   : > { %v1029_v3 = vmax.f32 %v1009_v63, 0.0 }
 0x404   : > { %v1038_v4 = vpack.c.bf16 %v1029_v3, %v1028_v0 }
 0x406   : > { %1371 = vmatmul.msk.bf16.gmra.mxu2 %vm416_vm0, %v1038_v4 }
 0x407   : > { %v1011_v5 = vpop.f32.mrf.mxu0 }
 0x408   : > { %v1012_v6 = vadd.f32 %v1701_v29, %v1011_v5 }
 0x40a   : > { %v1030_v9 = vmax.f32 %v1012_v6, 0.0 }
 0x40f   : > { %v1013_v7 = vpop.f32.mrf.mxu0 }
 0x410   : > { %v1014_v8 = vadd.f32 %v1701_v29, %v1013_v7 }
 0x412   : > { %v1031_v10 = vmax.f32 %v1014_v8, 0.0 }
 0x414   : > { %v1039_v11 = vpack.c.bf16 %v1031_v10, %v1030_v9 }
 0x416   : > { %1372 = vmatmul.msk.bf16.gmra.mxu2 %vm416_vm0, %v1039_v11 }
 0x429   : > { %v1073_v12 = vpop.f32.mrf.mxu2 }
 0x42a   : > { %v1074_v13 = vadd.f32 %v1734_v35, %v1073_v12 }
 0x42c   : > { %v1113_v16 = vmax.f32 %v1074_v13, 0.0 }
 0x431   : > { %v1075_v14 = vpop.f32.mrf.mxu2 }
 0x432   : > { %v1076_v15 = vadd.f32 %v1734_v35, %v1075_v14 }
 0x434   : > { %v1114_v17 = vmax.f32 %v1076_v15, 0.0 }
 0x436   : > { %v1862_v18 = vpack.c.bf16 %v1114_v17, %v1113_v16 }
 0x438   : > { %v1138_v15 = vsel %vm757_vm2, %v1862_v18, 0 }
 0x439   : > { %v1078_v19 = vpop.f32.mrf.mxu2 }
 0x43a   : > { %v1079_v21 = vadd.f32 %v1734_v35, %v1078_v19 }
 0x43c   : > { %v1115_v23 = vmax.f32 %v1079_v21, 0.0 }
 0x441   : > { %v1080_v22 = vpop.f32.mrf.mxu2 }
 0x442   : > { %v1081_v29 = vadd.f32 %v1734_v35, %v1080_v22 }
 0x444   : > { %v1116_v32 = vmax.f32 %v1081_v29, 0.0 }
 0x446   : > { %v1130_v28 = vpack.c.bf16 %v1116_v32, %v1115_v23 }
 0x449   : > { %v1083_v30 = vpop.f32.mrf.mxu2 }
 0x44a   : > { %v1084_v31 = vadd.f32 %v1734_v35, %v1083_v30 }
 0x44c   : > { %v1117_v33 = vmax.f32 %v1084_v31, 0.0 }
 0x451   : > { %v1085_v27 = vpop.f32.mrf.mxu2 }
 0x452   : > { %v1086_v26 = vadd.f32 %v1734_v35, %v1085_v27 }
 0x454   : > { %v1118_v34 = vmax.f32 %v1086_v26, 0.0 }
 0x456   : > { %v1131_v25 = vpack.c.bf16 %v1118_v34, %v1117_v33 }
 0x458   : > { %v1144_v14 = vsel %vm757_vm2, %v1131_v25, 0 }
 0x459   : > { %v1088_v36 = vpop.f32.mrf.mxu2 }
 0x45a   : > { %v1089_v37 = vadd.f32 %v1734_v35, %v1088_v36 }
 0x45c   : > { %v1119_v39 = vmax.f32 %v1089_v37, 0.0 }
 0x461   : > { %v1090_v1 = vpop.f32.mrf.mxu2 }
 0x462   : > { %v1091_v38 = vadd.f32 %v1734_v35, %v1090_v1 }
 0x464   : > { %v1120_v40 = vmax.f32 %v1091_v38, 0.0 }
 0x466   : > { %v1132_v2 = vpack.c.bf16 %v1120_v40, %v1119_v39 }
 0x468   : > { %v1147_v13 = vsel %vm757_vm2, %v1132_v2, 0 }
 0x469   : > { %v1093_v41 = vpop.f32.mrf.mxu2 }
 0x46a   : > { %v1094_v42 = vadd.f32 %v1734_v35, %v1093_v41 }
 0x46c   : > { %v1121_v45 = vmax.f32 %v1094_v42, 0.0 }
 0x471   : > { %v1095_v43 = vpop.f32.mrf.mxu2 }
 0x472   : > { %v1096_v44 = vadd.f32 %v1734_v35, %v1095_v43 }
 0x474   : > { %v1122_v46 = vmax.f32 %v1096_v44, 0.0 }
 0x476   : > { %v1133_v47 = vpack.c.bf16 %v1122_v46, %v1121_v45 }
 0x478   : > { %v1150_v12 = vsel %vm757_vm2, %v1133_v47, 0 }
 0x479   : > { %v1098_v48 = vpop.f32.mrf.mxu2 }
 0x47a   : > { %v1099_v6 = vadd.f32 %v1734_v35, %v1098_v48 }
 0x47c   : > { %v1123_v9 = vmax.f32 %v1099_v6, 0.0 }
 0x481   : > { %v1100_v49 = vpop.f32.mrf.mxu2 }
 0x482   : > { %v1101_v4 = vadd.f32 %v1734_v35, %v1100_v49 }
 0x484   : > { %v1124_v7 = vmax.f32 %v1101_v4, 0.0 }
 0x486   : > { %v1134_v10 = vpack.c.bf16 %v1124_v7, %v1123_v9 }
 0x488   : > { %v1153_v11 = vsel %vm757_vm2, %v1134_v10, 0 }
 0x489   : > { %v1103_v50 = vpop.f32.mrf.mxu2 }
 0x48a   : > { %v1104_v61 = vadd.f32 %v1734_v35, %v1103_v50 }
 0x48c   : > { %v1125_v3 = vmax.f32 %v1104_v61, 0.0 }
 0x491   : > { %v1105_v51 = vpop.f32.mrf.mxu2 }
 0x492   : > { %v1106_v56 = vadd.f32 %v1734_v35, %v1105_v51 }
 0x494   : > { %v1126_v63 = vmax.f32 %v1106_v56, 0.0 }
 0x496   : > { %v1135_v5 = vpack.c.bf16 %v1126_v63, %v1125_v3 }
 0x498   : > { %v1156_v8 = vsel %vm757_vm2, %v1135_v5, 0 }
 0x499   : > { %v1108_v52 = vpop.f32.mrf.mxu2 }
 0x49a   : > { %v1109_v53 = vadd.f32 %v1734_v35, %v1108_v52 }
 0x49c   : > { %v1127_v59 = vmax.f32 %v1109_v53, 0.0 }
 0x4a1   : > { %v1110_v54 = vpop.f32.mrf.mxu2 }
 0x4a2   : > { %v1111_v55 = vadd.f32 %v1734_v35, %v1110_v54  ;;  %v1141_v35 = vsel %vm757_vm2, %v1130_v28, 0 }
 0x4a4   : > { %v1128_v60 = vmax.f32 %v1111_v55, 0.0 }
 0x4a6   : > { %v1136_v62 = vpack.c.bf16 %v1128_v60, %v1127_v59 }
 0x4a8   : > { %v1159_v0 = vsel %vm757_vm2, %v1136_v62, 0 }
 0x4a9   : > { %1161 = vmatpush.bf16.xpose.msra.mxu1 %v1159_v0 }
 0x4b1   : > { %1162 = vmatpush.bf16.xpose.msra.mxu1 %v1156_v8 }
 0x4b9   : > { %1163 = vmatpush.bf16.xpose.msra.mxu1 %v1153_v11 }
 0x4c1   : > { %1164 = vmatpush.bf16.xpose.msra.mxu1 %v1150_v12 }
 0x4c9   : > { %1165 = vmatpush.bf16.xpose.msra.mxu1 %v1147_v13 }
 0x4d1   : > { %1166 = vmatpush.bf16.xpose.msra.mxu1 %v1144_v14 }
 0x4d9   : > { %1167 = vmatpush.bf16.xpose.msra.mxu1 %v1141_v35 }
 0x4e1   : > { %1168 = vmatpush.bf16.xpose.msra.mxu1 %v1138_v15 }
 0x4e8   : > { %1373 = vmatmul.msk.bf16.vlgmr.msra.gmra.mxu1 %vm757_vm2, %v1766_v24 }
 0x565   : > { %v1170_v16 = vpop.f32.mrf.mxu1 }
 0x566   : > { %v1171_v17 = vadd.f32 %v1170_v16, %v756_v58 }
 0x568   : > { %v1174_v19 = vsub.f32 0.0, %v1171_v17 }
 0x56a   : > { %v1175_v21 = vmul.f32 1.442695, %v1174_v19 }
 0x56c   : > { %1437 = vpow2.f32 %v1175_v21 }
 0x56d   : > { %v1172_v22 = vpop.f32.mrf.mxu1 }
 0x572   : > { %v1438_v29 = vpop.eup %1437 }
 0x573   : > { %v1177_v23 = vadd.f32 1.0, %v1438_v29 }
 0x575   : > { %1439 = vrcp.f32 %v1177_v23  ;;  %v1189_v24 = vand.u32 2147483648, %v1177_v23  ;;  %v1187_v58 = vand.u32 2147483647, %v1177_v23  ;;  %vm1183_vm9 = vweird.f32 %v1177_v23 }
 0x577   : > { %v1190_v31 = vor.u32 1.1754944e-38, %v1189_v24  ;;  %vm1188_vm11 = vcmp.eq.f32.partialorder %v1187_v58, 8.507059e+37 }
 0x57b   : > { %v1440_v32 = vpop.eup %1439 }
 0x57c   : > { %v1179_v28 = vmul.f32 %v1440_v32, %v1177_v23  ;;  %vm1184_vm8 = vweird.f32 %v1440_v32 }
 0x57d   : > { %vm1185_vm10 = vmor %vm1183_vm9, %vm1184_vm8 }
 0x57e   : > { %v1180_v18 = vsub.f32 1.0, %v1179_v28 }
 0x580   : > { %v1181_v57 = vmul.f32 %v1440_v32, %v1180_v18 }
 0x582   : > { %v1182_v30 = vadd.f32 %v1440_v32, %v1181_v57 }
 0x584   : > { %v1186_v27 = vsel %vm1185_vm10, %v1440_v32, %v1182_v30 }
 0x585   : > { %v1191_v26 = vsel %vm1188_vm11, %v1190_v31, %v1186_v27 }
 0x586   : > { %1374 = vst.msk [vmem:[%s1810_s27 + $0x1] sm:$0x1] %vm1805_vm6, %v1191_v26 }
 0x587   : > { %1468 = shalt.err (!%p1465_p3)
}
 0x588   : > { %1389 = dma.vmem_to_hbm [thread:$0]  (%p1597_p5), %s1208_s17, 32, %s1210_s18, %s1195_s8  }
 0x589 PF: > { %p1395_p4 = scmp.ge.s32.totalorder %s1503_s14, 2  ;;  %s1221_s30 = sand.u32 1, %s1491_s11  }
 0x58a   : > { %s1222_s27 = scalar_lea.sflag [#allocation4], %s1221_s30 }
 0x58b   : > { %p1392_p7 = pnand %p1395_p4, %p1601_p6 }
 0x58d   : > { %p1393_p8 = pneg %p1392_p7 }
 0x58f   : > { %1486 = dma.done.wait (%p1393_p8), %s1222_s27, 32  }
 0x590   : > { %1488 = vsyncadd (%p1393_p8), %s1222_s27, 4294967264  ;;  %p21_p9 = scmp.ge.s32.totalorder %s1584_s16, 4   ;;  %s1942_s11 = smov %s1495_s12 }
 0x591   : > { %s1943_s12 = smov %s1499_s13  ;;  %s1944_s13 = smov %s1595_s19 }
 0x592   : > { %s1945_s14 = smov %s1584_s16  ;;  %23 = sbr.rel (!%p21_p9) target bundleno = 6 (0x6), region = 93 }
 0x597   :  { %1228 = vsyncpa [#allocation4], 1 }
 0x598   :  { %1230 = vsyncpa [#allocation4 + $0x1], 1 }

</bundles_post_ra>
